<compile_context>
chip_gen: v7x
topology: tpu7x:2x2x1
jax: 0.10.0
libtpu: 0.0.40
codegen_flags: <defaults>
</compile_context>

<pallas_src>
import jax
import jax.numpy as jnp
from jax.experimental import pallas as pl
from jax.experimental.pallas import tpu as pltpu

_LEAKY_SLOPE = 0.2  # nn.LeakyReLU(0.2)


def _mlp_kernel(x_ref, w0_ref, b0_ref, w1_ref, b1_ref, w2t_ref, b2t_ref, ot_ref):
    # fc0 + LeakyReLU(0.2): bf16 MXU operands, f32 accumulate, f32 elementwise.
    x = x_ref[...].astype(jnp.bfloat16)
    h = jnp.dot(x, w0_ref[...], preferred_element_type=jnp.float32) + b0_ref[...]
    h = jnp.maximum(h, _LEAKY_SLOPE * h)

    # fc1 + LeakyReLU(0.2)
    h = jnp.dot(h.astype(jnp.bfloat16), w1_ref[...],
                preferred_element_type=jnp.float32) + b1_ref[...]
    h = jnp.maximum(h, _LEAKY_SLOPE * h)

    # fc head (outdim tiny, default 1): VPU multiply + XLU lane reduction
    # instead of a (tb,128)x(128,1) MXU matmul; emits lane-dense (outdim, tb).
    w2t = w2t_ref[...]                       # (outdim, width) f32
    b2t = b2t_ref[...]                       # (outdim, 1)     f32
    outdim = w2t.shape[0]
    tb = h.shape[0]
    rows = []
    for j in range(outdim):                  # static unroll; outdim is tiny
        col = jnp.sum(h * w2t[j:j + 1, :], axis=-1, keepdims=True)   # (tb, 1)
        rows.append(col.reshape(1, tb) + b2t[j:j + 1, :])            # (1, tb)
    out_t = rows[0] if outdim == 1 else jnp.concatenate(rows, axis=0)
    ot_ref[...] = out_t.astype(ot_ref.dtype)


def init_mlp_d_toy_params(key, nx, outdim=1, width=128, dtype=jnp.float32):
    """PyTorch nn.Linear style uniform init (bound = 1/sqrt(fan_in))."""
    ks = jax.random.split(key, 6)

    def lin(kw, kb, fan_in, fan_out):
        bound = 1.0 / (fan_in ** 0.5)
        w = jax.random.uniform(kw, (fan_in, fan_out), dtype, -bound, bound)
        b = jax.random.uniform(kb, (1, fan_out), dtype, -bound, bound)
        return w, b

    w0, b0 = lin(ks[0], ks[1], nx, width)
    w1, b1 = lin(ks[2], ks[3], width, width)
    w2, b2 = lin(ks[4], ks[5], width, outdim)
    return dict(w0=w0, b0=b0, w1=w1, b1=b1, w2=w2, b2=b2)


def _round_up(n, m):
    return ((n + m - 1) // m) * m


def _choose_batch_tile(B, block_b):
    """Pick the batch tile.

    The lane-dense transposed output block (outdim, tb) requires tb to be a
    multiple of 128 unless it spans the full batch.  Whenever the batch can be
    split into >= 2 legal tiles we do so, so v7x's 2 TensorCores both get work
    on the "parallel" grid axis (harmless on 1-TC v5e/v6e).
    """
    block_b = max(128, (block_b // 128) * 128)
    half = _round_up(pl.cdiv(B, 2), 128)
    tb = min(block_b, half)
    if tb >= B:
        return B  # single full-batch tile (block == full dim is always legal)
    return tb


def mlp_d_toy_forward(x, params, *, block_b=8192):
    """Fused Pallas forward of MLP_D_Toy (default config).

    x: (B, nx), f32 or bf16 (bf16 halves the dominant HBM read).
    Returns (B, outdim) float32.
    """
    B, nx = x.shape
    w0 = params["w0"].astype(jnp.bfloat16)          # MXU operands in bf16
    w1 = params["w1"].astype(jnp.bfloat16)
    b0 = params["b0"].astype(jnp.float32)           # bias / elementwise in f32
    b1 = params["b1"].astype(jnp.float32)
    w2t = params["w2"].astype(jnp.float32).T        # (outdim, width), VPU head
    b2t = params["b2"].astype(jnp.float32).T        # (outdim, 1)
    width = w0.shape[1]
    outdim = w2t.shape[0]

    tb = _choose_batch_tile(B, block_b)
    grid = (pl.cdiv(B, tb),)

    flops = 2 * B * (nx * width + width * width + width * outdim)
    bytes_accessed = (
        x.size * x.dtype.itemsize
        + w0.size * 2 + w1.size * 2
        + (b0.size + b1.size + w2t.size + b2t.size) * 4
        + B * outdim * 4
    )

    def const_spec(shape):
        # Weights/biases: same block every grid step -> stays VMEM-resident.
        return pl.BlockSpec(shape, lambda i: (0, 0))

    out_t = pl.pallas_call(
        _mlp_kernel,
        out_shape=jax.ShapeDtypeStruct((outdim, B), jnp.float32),
        grid_spec=pl.GridSpec(
            grid=grid,
            in_specs=[
                pl.BlockSpec((tb, nx), lambda i: (i, 0)),    # activations
                const_spec(w0.shape), const_spec(b0.shape),
                const_spec(w1.shape), const_spec(b1.shape),
                const_spec(w2t.shape), const_spec(b2t.shape),
            ],
            # Lane-dense transposed output slab: block last dim = tb
            # (multiple of 128, or the whole batch).
            out_specs=pl.BlockSpec((outdim, tb), lambda i: (0, i)),
        ),
        compiler_params=pltpu.CompilerParams(
            dimension_semantics=("parallel",),
        ),
        cost_estimate=pl.CostEstimate(
            flops=flops, transcendentals=0, bytes_accessed=bytes_accessed
        ),
    )(x, w0, b0, w1, b1, w2t, b2t)

    # Undo the transposed layout.  For outdim == 1 (the module default) this is
    # metadata-only, matching the PyTorch `output.view(B, outdim)`.
    if outdim == 1:
        return out_t.reshape(B, 1)
    return out_t.T


def _reference_forward(x, p):
    """Pure-JAX reference with the same bf16 operand rounding as the kernel."""
    f32, bf16 = jnp.float32, jnp.bfloat16
    hp = jax.lax.Precision.HIGHEST

    def rnd(a):
        return a.astype(bf16).astype(f32)

    h = jnp.dot(rnd(x), rnd(p["w0"]), precision=hp) + p["b0"]
    h = jnp.maximum(h, _LEAKY_SLOPE * h)
    h = jnp.dot(rnd(h), rnd(p["w1"]), precision=hp) + p["b1"]
    h = jnp.maximum(h, _LEAKY_SLOPE * h)
    out = jnp.dot(h, p["w2"], precision=hp) + p["b2"]
    return out.reshape(out.shape[0], p["w2"].shape[1])


if __name__ == "__main__":
    key = jax.random.PRNGKey(0)
    kx, kp = jax.random.split(key)

    # Shapes consistent with the module: nx=32, width=128, outdim=1.
    nx, width, outdim = 32, 128, 1
    params = init_mlp_d_toy_params(kp, nx, outdim=outdim, width=width)

    # B=8   -> single full-batch tile (grid=1)
    # B=300 -> 2 grid steps, ragged last tile (masked writeback)
    # B=512 -> 2 even grid steps (v7x 2-TC split path)
    for B in (8, 300, 512):
        xb = jax.random.normal(jax.random.fold_in(kx, B), (B, nx),
                               dtype=jnp.float32)
        y = jax.block_until_ready(mlp_d_toy_forward(xb, params))
        ref = _reference_forward(xb, params)
        assert y.shape == (B, outdim), (y.shape, (B, outdim))
        assert y.dtype == ref.dtype, (y.dtype, ref.dtype)
        assert bool(jnp.allclose(y, ref, atol=1e-3, rtol=1e-3)), (
            B, float(jnp.max(jnp.abs(y - ref)))
        )

    print("KERNEL_OK")
</pallas_src>

<mosaic_0001>
module attributes {stable_mosaic.version = 11 : i64} {
  func.func @_mlp_kernel(%arg0: i32, %arg1: memref<8x32xf32, #tpu.memory_space<vmem>>, %arg2: memref<32x128xbf16, #tpu.memory_space<vmem>>, %arg3: memref<1x128xf32, #tpu.memory_space<vmem>>, %arg4: memref<128x128xbf16, #tpu.memory_space<vmem>>, %arg5: memref<1x128xf32, #tpu.memory_space<vmem>>, %arg6: memref<1x128xf32, #tpu.memory_space<vmem>>, %arg7: memref<1x1xf32, #tpu.memory_space<vmem>>, %arg8: memref<1x8xf32, #tpu.memory_space<vmem>>) attributes {dimension_semantics = [#tpu.dimension_semantics<parallel>], iteration_bounds = array<i64: 1>, scalar_prefetch = 0 : i64, scratch_operands = 0 : i64, tpu.core_type = #tpu.core_type<tc>, window_params = [{transform_indices = @transform_0, window_bounds = array<i64: 8, 32>}, {pipeline_mode = #tpu.pipeline_mode<synchronous>, transform_indices = @transform_1, window_bounds = array<i64: 32, 128>}, {pipeline_mode = #tpu.pipeline_mode<synchronous>, transform_indices = @transform_2, window_bounds = array<i64: 1, 128>}, {pipeline_mode = #tpu.pipeline_mode<synchronous>, transform_indices = @transform_3, window_bounds = array<i64: 128, 128>}, {pipeline_mode = #tpu.pipeline_mode<synchronous>, transform_indices = @transform_4, window_bounds = array<i64: 1, 128>}, {pipeline_mode = #tpu.pipeline_mode<synchronous>, transform_indices = @transform_5, window_bounds = array<i64: 1, 128>}, {pipeline_mode = #tpu.pipeline_mode<synchronous>, transform_indices = @transform_6, window_bounds = array<i64: 1, 1>}, {transform_indices = @transform_7, window_bounds = array<i64: 1, 8>}]} {
    %c0 = arith.constant 0 : index
    %c0_0 = arith.constant 0 : index
    %0 = vector.load %arg1[%c0, %c0_0] : memref<8x32xf32, #tpu.memory_space<vmem>>, vector<8x32xf32>
    %1 = arith.truncf %0 : vector<8x32xf32> to vector<8x32xbf16>
    %c0_1 = arith.constant 0 : index
    %c0_2 = arith.constant 0 : index
    %2 = vector.load %arg2[%c0_1, %c0_2] : memref<32x128xbf16, #tpu.memory_space<vmem>>, vector<32x128xbf16>
    %cst = arith.constant dense<0.000000e+00> : vector<8x128xf32>
    %3 = tpu.matmul %1, %2, %cst {dimension_numbers = #tpu.dot_dimension_numbers<[1], [0], [0], [1], [0, 0, 1, 1], [], []>} : vector<8x32xbf16>, vector<32x128xbf16>, vector<8x128xf32> -> vector<8x128xf32>
    %c0_3 = arith.constant 0 : index
    %c0_4 = arith.constant 0 : index
    %4 = vector.load %arg3[%c0_3, %c0_4] : memref<1x128xf32, #tpu.memory_space<vmem>>, vector<1x128xf32>
    %5 = vector.broadcast %4 : vector<1x128xf32> to vector<8x128xf32>
    %6 = arith.addf %3, %5 : vector<8x128xf32>
    %cst_5 = arith.constant 2.000000e-01 : f32
    %7 = vector.broadcast %cst_5 : f32 to vector<8x128xf32>
    %8 = arith.mulf %7, %6 : vector<8x128xf32>
    %9 = arith.maximumf %6, %8 : vector<8x128xf32>
    %10 = arith.truncf %9 : vector<8x128xf32> to vector<8x128xbf16>
    %c0_6 = arith.constant 0 : index
    %c0_7 = arith.constant 0 : index
    %11 = vector.load %arg4[%c0_6, %c0_7] : memref<128x128xbf16, #tpu.memory_space<vmem>>, vector<128x128xbf16>
    %cst_8 = arith.constant dense<0.000000e+00> : vector<8x128xf32>
    %12 = tpu.matmul %10, %11, %cst_8 {dimension_numbers = #tpu.dot_dimension_numbers<[1], [0], [0], [1], [0, 0, 1, 1], [], []>} : vector<8x128xbf16>, vector<128x128xbf16>, vector<8x128xf32> -> vector<8x128xf32>
    %c0_9 = arith.constant 0 : index
    %c0_10 = arith.constant 0 : index
    %13 = vector.load %arg5[%c0_9, %c0_10] : memref<1x128xf32, #tpu.memory_space<vmem>>, vector<1x128xf32>
    %14 = vector.broadcast %13 : vector<1x128xf32> to vector<8x128xf32>
    %15 = arith.addf %12, %14 : vector<8x128xf32>
    %cst_11 = arith.constant 2.000000e-01 : f32
    %16 = vector.broadcast %cst_11 : f32 to vector<8x128xf32>
    %17 = arith.mulf %16, %15 : vector<8x128xf32>
    %18 = arith.maximumf %15, %17 : vector<8x128xf32>
    %c0_12 = arith.constant 0 : index
    %c0_13 = arith.constant 0 : index
    %19 = vector.load %arg6[%c0_12, %c0_13] : memref<1x128xf32, #tpu.memory_space<vmem>>, vector<1x128xf32>
    %c0_14 = arith.constant 0 : index
    %c0_15 = arith.constant 0 : index
    %20 = vector.load %arg7[%c0_14, %c0_15] : memref<1x1xf32, #tpu.memory_space<vmem>>, vector<1x1xf32>
    %21 = vector.broadcast %19 : vector<1x128xf32> to vector<8x128xf32>
    %22 = arith.mulf %18, %21 : vector<8x128xf32>
    %cst_16 = arith.constant dense<0.000000e+00> : vector<8xf32>
    %23 = vector.multi_reduction <add>, %22, %cst_16 [1] : vector<8x128xf32> to vector<8xf32>
    %24 = vector.shape_cast %23 : vector<8xf32> to vector<8x1xf32>
    %25 = vector.shape_cast %24 : vector<8x1xf32> to vector<1x8xf32>
    %26 = vector.broadcast %20 : vector<1x1xf32> to vector<1x8xf32>
    %27 = arith.addf %25, %26 : vector<1x8xf32>
    %c0_17 = arith.constant 0 : index
    %c0_18 = arith.constant 0 : index
    %28 = vector.load %arg8[%c0_17, %c0_18] : memref<1x8xf32, #tpu.memory_space<vmem>>, vector<1x8xf32>
    tpu.vector_store %arg8[%c0_17, %c0_18], %27 {strides = array<i32>} : memref<1x8xf32, #tpu.memory_space<vmem>>, vector<1x8xf32>,
    return
  }
  func.func @transform_0(%arg0: i32) -> (i32, i32) {
    %c0_i32 = arith.constant 0 : i32
    %c0_i32_0 = arith.constant 0 : i32
    return %arg0, %c0_i32 : i32, i32
  }
  func.func @transform_1(%arg0: i32) -> (i32, i32) {
    %c0_i32 = arith.constant 0 : i32
    %c0_i32_0 = arith.constant 0 : i32
    %c0_i32_1 = arith.constant 0 : i32
    return %c0_i32, %c0_i32_0 : i32, i32
  }
  func.func @transform_2(%arg0: i32) -> (i32, i32) {
    %c0_i32 = arith.constant 0 : i32
    %c0_i32_0 = arith.constant 0 : i32
    %c0_i32_1 = arith.constant 0 : i32
    return %c0_i32, %c0_i32_0 : i32, i32
  }
  func.func @transform_3(%arg0: i32) -> (i32, i32) {
    %c0_i32 = arith.constant 0 : i32
    %c0_i32_0 = arith.constant 0 : i32
    %c0_i32_1 = arith.constant 0 : i32
    return %c0_i32, %c0_i32_0 : i32, i32
  }
  func.func @transform_4(%arg0: i32) -> (i32, i32) {
    %c0_i32 = arith.constant 0 : i32
    %c0_i32_0 = arith.constant 0 : i32
    %c0_i32_1 = arith.constant 0 : i32
    return %c0_i32, %c0_i32_0 : i32, i32
  }
  func.func @transform_5(%arg0: i32) -> (i32, i32) {
    %c0_i32 = arith.constant 0 : i32
    %c0_i32_0 = arith.constant 0 : i32
    %c0_i32_1 = arith.constant 0 : i32
    return %c0_i32, %c0_i32_0 : i32, i32
  }
  func.func @transform_6(%arg0: i32) -> (i32, i32) {
    %c0_i32 = arith.constant 0 : i32
    %c0_i32_0 = arith.constant 0 : i32
    %c0_i32_1 = arith.constant 0 : i32
    return %c0_i32, %c0_i32_0 : i32, i32
  }
  func.func @transform_7(%arg0: i32) -> (i32, i32) {
    %c0_i32 = arith.constant 0 : i32
    %c0_i32_0 = arith.constant 0 : i32
    return %c0_i32, %arg0 : i32, i32
  }
}

</mosaic_0001>

<bundles_post_ra>
// kernel: tpu_custom_call.1
= control target key start
LH: loop header
LB: loop body
LE: loop exit
PB: predicated region body
PF: predicated region fallthrough
CT: control target
= control target key end

     0   :  { %s584_s0 = inlined_call_operand.hbm [shape: f32[8,32], index: 0, kind: input, shape index: {}]   ;;  %s585_s1 = inlined_call_operand.hbm [shape: bf16[32,128], index: 1, kind: input, shape index: {}]   ;;  %s586_s2 = inlined_call_operand.vmem [shape: f32[1,128], index: 2, kind: input, shape index: {}]   ;;  %s587_s3 = inlined_call_operand.hbm [shape: bf16[128,128], index: 3, kind: input, shape index: {}]   ;;  %s588_s4 = inlined_call_operand.vmem [shape: f32[1,128], index: 4, kind: input, shape index: {}]   ;;  %s589_s5 = inlined_call_operand.vmem [shape: f32[1,128], index: 5, kind: input, shape index: {}]   ;;  %s590_s6 = inlined_call_operand.<no memory space> [shape: f32[1,1], index: 6, kind: input, shape index: {}]   ;;  %s591_s7 = inlined_call_operand.hbm [shape: f32[1,8], index: 7, kind: output, shape index: {}]  }
   0x1   :  { %v12_v0 = vstv %s590_s6 }
   0x2   :  { %13 = vst [vmem:[#allocation2] sm:$0x1] %v12_v0 }
   0x3   :  { %14 = vsyncpa [#allocation4], 0 }
   0x4   :  { %15 = vsyncpa [#allocation7], 0 }
   0x5   :  { %16 = vsyncpa [#allocation5], 0  ;;  %s469_s26 = smov [#allocation6]   ;;  %s375_s30 = scalar_lea.hbm %s585_s1, 256 }
   0x6   :  { %s32_s27 = sshll.u32 %s469_s26, 4  ;;  %p376_p0 = scmp.ne.s32.totalorder %s585_s1, %s375_s30  ;;  %s33_s27 = int_to_ptr.vmem [resolvable:$true] %s32_s27 }
   0x7   :  { %p379_p1 = scmp.lt.u32.totalorder %s375_s30, %s585_s1 }
   0x9   :  { %p381_p2 = pnand %p379_p1, %p376_p0 }
   0xb   :  { %384 = shalt.err (!%p381_p2)
}
   0xc   :  { %s385_s6 = scalar_lea.vmem %s33_s27, 256  ;;  %p390_p4 = scmp.lt.s32.totalorder %s33_s27, %s33_s27 }
   0xd   :  { %p386_p3 = scmp.ne.s32.totalorder %s33_s27, %s385_s6  ;;  %p391_p5 = scmp.lt.s32.totalorder %s385_s6, %s385_s6 }
   0xf   :  { %p392_p6 = por %p391_p5, %p390_p4 }
  0x11   :  { %p393_p7 = pnand %p392_p6, %p386_p3 }
  0x13   :  { %396 = shalt.err (!%p393_p7)
}
  0x14   :  { %s470_s12 = smov 64   ;;  %s471_s13 = smov 4  }
  0x15   :  { %38 = dma.hbm_to_vmem [thread:$0]  %s585_s1, 256, %s33_s27, [#allocation7], %s470_s12, %s470_s12, %s471_s13  }
  0x16   :  { %s472_s16 = smov [#allocation3]   ;;  %s473_s18 = smov [#allocation8]  }
  0x17   :  { %s23_s17 = sshll.u32 %s472_s16, 4  ;;  %s46_s19 = sshll.u32 %s473_s18, 4  ;;  %s24_s17 = int_to_ptr.vmem [resolvable:$true] %s23_s17  ;;  %s47_s19 = int_to_ptr.vmem [resolvable:$true] %s46_s19 }
  0x18   :  { %s397_s22 = scalar_lea.hbm %s584_s0, 128 }
  0x19   :  { %p398_p8 = scmp.ne.s32.totalorder %s584_s0, %s397_s22  ;;  %p401_p9 = scmp.lt.u32.totalorder %s397_s22, %s584_s0 }
  0x1b   :  { %p403_p10 = pnand %p401_p9, %p398_p8 }
  0x1d   :  { %406 = shalt.err (!%p403_p10)
}
  0x1e   :  { %s407_s1 = scalar_lea.vmem %s24_s17, 128  ;;  %p412_p12 = scmp.lt.s32.totalorder %s24_s17, %s24_s17 }
  0x1f   :  { %p408_p11 = scmp.ne.s32.totalorder %s24_s17, %s407_s1  ;;  %p413_p13 = scmp.lt.s32.totalorder %s407_s1, %s407_s1 }
  0x21   :  { %p414_p0 = por %p413_p13, %p412_p12 }
  0x23   :  { %p415_p1 = pnand %p414_p0, %p408_p11 }
  0x25   :  { %418 = shalt.err (!%p415_p1)
}
  0x26   :  { %26 = dma.hbm_to_vmem [thread:$0]  %s584_s0, 128, %s24_s17, [#allocation4]  }
  0x27   :  { %s419_s8 = scalar_lea.hbm %s587_s3, 1024 }
  0x28   :  { %p420_p2 = scmp.ne.s32.totalorder %s587_s3, %s419_s8  ;;  %p423_p3 = scmp.lt.u32.totalorder %s419_s8, %s587_s3 }
  0x2a   :  { %p425_p4 = pnand %p423_p3, %p420_p2 }
  0x2c   :  { %428 = shalt.err (!%p425_p4)
}
  0x2d   :  { %s429_s14 = scalar_lea.vmem %s47_s19, 1024  ;;  %p434_p6 = scmp.lt.s32.totalorder %s47_s19, %s47_s19 }
  0x2e   :  { %p430_p5 = scmp.ne.s32.totalorder %s47_s19, %s429_s14  ;;  %p435_p7 = scmp.lt.s32.totalorder %s429_s14, %s429_s14 }
  0x30   :  { %p436_p8 = por %p435_p7, %p434_p6 }
  0x32   :  { %p437_p9 = pnand %p436_p8, %p430_p5 }
  0x34   :  { %440 = shalt.err (!%p437_p9)
}
  0x35   :  { %52 = dma.hbm_to_vmem [thread:$0]  %s587_s3, 1024, %s47_s19, [#allocation7], %s470_s12, %s470_s12, %s471_s13  }
  0x36   :  { %463 = dma.done.wait [#allocation4], 128  }
  0x37   :  { %464 = vsyncadd [#allocation4], 4294967168 }
  0x38   :  { %465 = dma.done.wait [#allocation7], 1280  }
  0x39   :  { %466 = vsyncadd [#allocation7], 4294966016  ;;  %v474_v1 = vmov 0.0   ;;  %vm475_vm0 = vmmov 0   ;;  %v365_v2 = vld [vmem:[#allocation6] sm:$0xff]   ;;  %v366_v3 = vld [vmem:[#allocation6 + $0x8] sm:$0xff]   ;;  %v270_v35 = vlaneseq }
  0x3a   :  { %327 = vmatprep.subr.bf16.mxu0 %v474_v1  ;;  %331 = vmatprep.mubr.msk.bf16.mxu0 %vm475_vm0, %v474_v1  ;;  %v69_v4 = vld [vmem:[#allocation3] sm:$0xff]  ;;  %v367_v5 = vld [vmem:[#allocation8] sm:$0xff]   ;;  %vm94_vm1 = vcmask 261120   ;;  %v369_v8 = vld [vmem:[#allocation8 + $0x10] sm:$0xff]   ;;  %v476_v23 = vmov 0   ;;  %vm283_vm2 = vcmask 57344  }
  0x3b   :  { %335 = vmatprep.subr.bf16.mxu1 %v474_v1  ;;  %351 = vmatprep.mubr.msk.bf16.mxu1 %vm475_vm0, %v474_v1  ;;  %v70_v6 = vpack.c.bf16 %v69_v4, %v69_v4  ;;  %v368_v7 = vld [vmem:[#allocation8 + $0x8] sm:$0xff]   ;;  %v370_v9 = vld [vmem:[#allocation8 + $0x18] sm:$0xff]   ;;  %v371_v10 = vld [vmem:[#allocation8 + $0x20] sm:$0xff]   ;;  %v271_v36 = vshrl.u32 %v270_v35, 7  ;;  %v277_v39 = vand.u32 127, %v270_v35 }
  0x3c   :  { %328 = vmatpush3.bf16.msra.mxu0 %v365_v2  ;;  %336 = vmatpush3.bf16.msra.mxu1 %v367_v5  ;;  %v372_v11 = vld [vmem:[#allocation8 + $0x28] sm:$0xff]   ;;  %v373_v12 = vld [vmem:[#allocation8 + $0x30] sm:$0xff]   ;;  %v374_v13 = vld [vmem:[#allocation8 + $0x38] sm:$0xff]  }
  0x3d   :  { %329 = vmatprep.subr.bf16.mxu0 %v474_v1  ;;  %337 = vmatprep.subr.bf16.mxu1 %v474_v1  ;;  %v301_v14 = vld [vmem:[%s586_s2] ss:$0 sm:$0xff]  ;;  %v272_v38 = vsub.s32 0, %v271_v36  ;;  %v280_v41 = vsub.s32 %v277_v39, %v271_v36 }
  0x3e   :  { %364 = vset.pattern.permute.xlu0 %v476_v23  ;;  %v305_v24 = vld [vmem:[%s588_s4] ss:$0 sm:$0xff]  ;;  %s477_s4 = smov [#allocation9]  }
  0x3f   :  { %v314_v31 = vld [vmem:[%s589_s5] ss:$0 sm:$0xff]  ;;  %s291_s18 = sshll.u32 %s477_s4, 4  ;;  %s292_s18 = int_to_ptr.vmem [resolvable:$true] %s291_s18 }
  0x40   :  { %330 = vmatpush3.bf16.msra.mxu0 %v366_v3  ;;  %338 = vmatpush3.bf16.msra.mxu1 %v368_v7  ;;  %v255_v34 = vld [vmem:[#allocation2] sm:$0x1]  ;;  %s441_s5 = scalar_lea.vmem %s292_s18, 16  ;;  %s445_s19 = scalar_lea.vmem %s292_s18, 32 }
  0x41   :  { %339 = vmatprep.subr.bf16.mxu1 %v474_v1  ;;  %p442_p10 = scmp.ne.s32.totalorder %s292_s18, %s441_s5  ;;  %p446_p11 = scmp.lt.s32.totalorder %s292_s18, %s292_s18 }
  0x42   :  { %p447_p12 = scmp.lt.s32.totalorder %s445_s19, %s441_s5 }
  0x43   :  { %332 = vmatmul.mubr.msk.bf16.vlgmr.msra.gmra.mrb[0].mxu0 %vm94_vm1, %v70_v6 }
  0x44   :  { %340 = vmatpush3.bf16.msra.mxu1 %v369_v8  ;;  %p448_p13 = por %p447_p12, %p446_p11 }
  0x45   :  { %341 = vmatprep.subr.bf16.mxu1 %v474_v1 }
  0x46   :  { %p449_p0 = pnand %p448_p13, %p442_p10 }
  0x48   :  { %342 = vmatpush3.bf16.msra.mxu1 %v370_v9 }
  0x49   :  { %343 = vmatprep.subr.bf16.mxu1 %v474_v1 }
  0x4c   :  { %344 = vmatpush3.bf16.msra.mxu1 %v371_v10 }
  0x4d   :  { %345 = vmatprep.subr.bf16.mxu1 %v474_v1 }
  0x50   :  { %346 = vmatpush3.bf16.msra.mxu1 %v372_v11 }
  0x51   :  { %347 = vmatprep.subr.bf16.mxu1 %v474_v1 }
  0x54   :  { %348 = vmatpush3.bf16.msra.mxu1 %v373_v12 }
  0x55   :  { %349 = vmatprep.subr.bf16.mxu1 %v474_v1 }
  0x58   :  { %350 = vmatpush3.bf16.msra.mxu1 %v374_v13 }
 0x116   :  { %v132_v15 = vpop.f32.mrb[0].mxu0 }
 0x117   :  { %v133_v16 = vadd.f32 %v301_v14, %v132_v15  ;;  %v333_v17 = vpop.f32.mrb[1].mxu0 }
 0x118   :  { %v135_v18 = vpop.f32.mrb[2].mxu0 }
 0x119   :  { %v138_v19 = vmul.f32 0.2, %v133_v16  ;;  %v334_v20 = vpop.f32.mrb[3].mxu0 }
 0x11b   :  { %v139_v21 = vmax.f32 %v133_v16, %v138_v19 }
 0x11d   :  { %v140_v22 = vpack.c.bf16 %v139_v21, %v139_v21 }
 0x11f   :  { %352 = vmatmul.mubr.bf16.vlgmr.msra.gmra.mrb[0].mxu1 %v140_v22 }
 0x1f2   :  { %v246_v25 = vpop.f32.mrb[0].mxu1 }
 0x1f3   :  { %v247_v26 = vadd.f32 %v305_v24, %v246_v25  ;;  %v353_v27 = vpop.f32.mrb[1].mxu1 }
 0x1f4   :  { %v249_v28 = vpop.f32.mrb[2].mxu1 }
 0x1f5   :  { %v252_v29 = vmul.f32 0.2, %v247_v26  ;;  %v354_v30 = vpop.f32.mrb[3].mxu1 }
 0x1f7   :  { %v253_v32 = vmax.f32 %v247_v26, %v252_v29 }
 0x1f9   :  { %v262_v33 = vmul.f32 %v314_v31, %v253_v32 }
 0x1fb   :  { %263 = vadd.xlane.f32.xlu0 %v262_v33 }
 0x211   :  { %267 = vperm.xlu0 %364, %v255_v34  }
 0x288   :  { %v264_v37 = vpop.xlane.xlu0 %263 }
 0x290   :  { %v268_v40 = vpop.permute.xlu0 %267 }
 0x291   :  { %v273_v42 = vrot.slane %v268_v40, %v272_v38 }
 0x293   :  { %v274_v43 = vadd.f32 %v273_v42, %v264_v37 }
 0x295   :  { %v281_v44 = vrot.slane %v274_v43, %v280_v41 }
 0x297   :  { %284 = vst.msk [vmem:[#allocation9] sm:$0x1] %vm283_vm2, %v281_v44 }
 0x298   :  { %452 = shalt.err (!%p449_p0)
}
 0x299   :  { %s453_s22 = scalar_lea.hbm %s591_s7, 16 }
 0x29a   :  { %p454_p1 = scmp.ne.s32.totalorder %s591_s7, %s453_s22  ;;  %p457_p2 = scmp.lt.u32.totalorder %s453_s22, %s591_s7 }
 0x29c   :  { %p459_p3 = pnand %p457_p2, %p454_p1 }
 0x29e   :  { %462 = shalt.err (!%p459_p3)
}
 0x29f   :  { %294 = dma.vmem_to_hbm [thread:$0]  %s292_s18, 16, %s591_s7, [#allocation5]  }
 0x2a0   :  { %467 = dma.done.wait [#allocation5], 16  }
 0x2a1   :  { %468 = vsyncadd [#allocation5], 4294967280 }
 0x2a2   :  { %298 = vsyncpa [#allocation4], 1 }
 0x2a3   :  { %299 = vsyncpa [#allocation7], 1 }
 0x2a4   :  { %300 = vsyncpa [#allocation5], 1 }

</bundles_post_ra>
